<compile_context>
chip_gen: v6e
topology: v6e:2x2x1
jax: 0.10.0
libtpu: 0.0.40
codegen_flags: <defaults>
</compile_context>

<pallas_src>
import functools

import jax
import jax.numpy as jnp
from jax.experimental import pallas as pl
from jax.experimental.pallas import tpu as pltpu

LANE = 128          # TPU lane width
SUBLANE_BF16 = 16   # bf16 sublane packing: batch-row tiles are multiples of 16
BM_TARGET = 512     # batch-row tile target (amortizes per-grid-step overhead)


def _round_up(n, m):
    return ((n + m - 1) // m) * m


def fused_distiller_kernel(x_ref, w1_ref, b1_ref, w2_ref, b2_ref, out_ref):
    """out = relu(x @ W1_pack + b1_pack) @ W2_pack + b2_pack (both branches packed).

    x / W1 / W2 are bf16 (native MXU operands); accumulation and the bias+ReLU
    epilogue stay in f32 (v5e has no bf16 VPU); h is cast back to bf16 for the
    second MXU matmul; the single lane-dense [bm, 2*128] output slab is f32.
    """
    x = x_ref[...]                                                 # bf16 [bm, d_in]
    h = jnp.dot(x, w1_ref[...], preferred_element_type=jnp.float32)
    h = jnp.maximum(h + b1_ref[...], 0.0)                          # f32 epilogue
    h = h.astype(jnp.bfloat16)                                     # bf16 MXU operand
    out = jnp.dot(h, w2_ref[...], preferred_element_type=jnp.float32)
    out_ref[...] = (out + b2_ref[...]).astype(out_ref.dtype)


def init_mlp_params(key, d_in, d_hidden, d_out):
    """Deterministic synthetic parameters (shapes follow nn.Linear pairs)."""
    k1, k2, k3, k4 = jax.random.split(key, 4)
    w1 = jax.random.normal(k1, (d_in, d_hidden), jnp.float32) * 0.02
    b1 = jax.random.normal(k2, (1, d_hidden), jnp.float32) * 0.01
    w2 = jax.random.normal(k3, (d_hidden, d_out), jnp.float32) * 0.02
    b2 = jax.random.normal(k4, (1, d_out), jnp.float32) * 0.01
    return (w1, b1, w2, b2)


def pack_distiller_params(student_params, teacher_params, d_in, n_classes):
    """One-time packing of both branches into a single fused MLP (outside hot path).

    Layer 1: student hidden occupies packed columns [0, hs), teacher [hs, hs+ht);
    zero-padded columns give relu(0)=0 and contribute nothing downstream.
    Layer 2: block structure -- student W2 maps its hidden slice to output lanes
    [0, n_classes), teacher W2 maps its slice to [BAND, BAND+n_classes), so the
    two logit sets never mix.  Weights are stored bf16, biases f32.
    """
    w1s, b1s, w2s, b2s = student_params
    w1t, b1t, w2t, b2t = teacher_params
    hs, ht = w1s.shape[1], w1t.shape[1]

    d_in_pad = _round_up(d_in, LANE)
    h_pack = _round_up(hs + ht, LANE)
    band = _round_up(n_classes, LANE)          # per-branch output band width
    out_pack = 2 * band

    w1 = jnp.zeros((d_in_pad, h_pack), jnp.float32)
    w1 = w1.at[:d_in, :hs].set(w1s).at[:d_in, hs:hs + ht].set(w1t)
    b1 = jnp.zeros((1, h_pack), jnp.float32)
    b1 = b1.at[:, :hs].set(b1s).at[:, hs:hs + ht].set(b1t)

    w2 = jnp.zeros((h_pack, out_pack), jnp.float32)
    w2 = w2.at[:hs, :n_classes].set(w2s)
    w2 = w2.at[hs:hs + ht, band:band + n_classes].set(w2t)
    b2 = jnp.zeros((1, out_pack), jnp.float32)
    b2 = b2.at[:, :n_classes].set(b2s).at[:, band:band + n_classes].set(b2t)

    return (w1.astype(jnp.bfloat16), b1, w2.astype(jnp.bfloat16), b2)


def fused_mlp(x2d_pad, packed, *, bm):
    """Run the packed student+teacher MLP on padded bf16 [B_pad, D_in_pad] input."""
    b_pad, d_in_pad = x2d_pad.shape
    w1, b1, w2, b2 = packed
    out_pack = w2.shape[1]

    row_map = lambda i: (i, 0)     # batch-row tiles march over the grid
    param_map = lambda i: (0, 0)   # weights/biases stay VMEM-resident

    return pl.pallas_call(
        fused_distiller_kernel,
        out_shape=jax.ShapeDtypeStruct((b_pad, out_pack), jnp.float32),
        grid=(b_pad // bm,),
        in_specs=[pl.BlockSpec((bm, d_in_pad), row_map),
                  pl.BlockSpec(w1.shape, param_map),
                  pl.BlockSpec(b1.shape, param_map),
                  pl.BlockSpec(w2.shape, param_map),
                  pl.BlockSpec(b2.shape, param_map)],
        out_specs=pl.BlockSpec((bm, out_pack), row_map),
        compiler_params=pltpu.CompilerParams(
            dimension_semantics=("parallel",)),
    )(x2d_pad, w1, b1, w2, b2)


@functools.partial(jax.jit, static_argnames=("n_classes",))
def distiller_forward(x, packed_params, n_classes):
    """Equivalent of Distiller.forward(x) -> (student_logits, teacher_logits)."""
    # TODO(synk): pallas_call has no automatic VJP; wrap in jax.custom_vjp if
    # gradients through the student branch are needed for the distillation loss.
    b = x.shape[0]
    d_in = 1
    for s in x.shape[1:]:
        d_in *= s
    x2d = x.reshape(b, d_in)          # flatten NCHW -> [B, C*H*W] (.view(B, -1))

    d_in_pad = packed_params[0].shape[0]
    band = packed_params[3].shape[1] // 2

    # Batch-row tile: large (amortizes per-grid-step overhead), bf16-sublane
    # aligned; split into >=2 grid steps when possible so v7x's 2nd TC is used.
    b_pad = _round_up(b, SUBLANE_BF16)
    bm = min(BM_TARGET, b_pad)
    steps = (b_pad + bm - 1) // bm
    if steps <= 1 and bm >= 2 * SUBLANE_BF16:
        bm = _round_up(bm // 2, SUBLANE_BF16)
    b_pad = _round_up(b_pad, bm)

    # bf16 input stream (halves HBM bytes); zero rows/cols contribute nothing.
    x2d_pad = jnp.zeros((b_pad, d_in_pad), jnp.bfloat16)
    x2d_pad = x2d_pad.at[:b, :d_in].set(x2d.astype(jnp.bfloat16))

    out = fused_mlp(x2d_pad, packed_params, bm=bm)

    student_logits = out[:b, :n_classes]
    # torch.no_grad() on the teacher branch -> stop_gradient in JAX.
    teacher_logits = jax.lax.stop_gradient(out[:b, band:band + n_classes])
    return student_logits, teacher_logits


if __name__ == "__main__":
    key = jax.random.PRNGKey(0)
    k_x, k_s, k_t = jax.random.split(key, 3)

    # Small, deterministic example input consistent with an image classifier.
    B, C, H, W = 2, 4, 16, 16
    n_classes = 10
    x = jax.random.normal(k_x, (B, C, H, W), jnp.float32)

    d_in = C * H * W   # 1024 -- already lane-aligned
    student_params = init_mlp_params(k_s, d_in, d_hidden=32, d_out=n_classes)
    teacher_params = init_mlp_params(k_t, d_in, d_hidden=64, d_out=n_classes)

    # One-time packing of both branches into hardware-native bf16 tiles.
    packed = pack_distiller_params(student_params, teacher_params, d_in, n_classes)

    student_logits, teacher_logits = distiller_forward(x, packed, n_classes)
    jax.block_until_ready((student_logits, teacher_logits))

    assert student_logits.shape == (B, n_classes)
    assert teacher_logits.shape == (B, n_classes)
    assert student_logits.dtype == jnp.float32
    assert teacher_logits.dtype == jnp.float32

    # Sanity check against a plain-JAX f32 reference for both branches.
    def ref_mlp(x2d, w1, b1, w2, b2):
        return jnp.maximum(x2d @ w1 + b1, 0.0) @ w2 + b2

    x2d = x.reshape(B, -1)
    ref_s = ref_mlp(x2d, *student_params)
    ref_t = ref_mlp(x2d, *teacher_params)
    # bf16 MXU operands (f32 accumulation) vs f32 reference -> loose tolerance.
    assert jnp.allclose(student_logits, ref_s, atol=2e-2, rtol=2e-2)
    assert jnp.allclose(teacher_logits, ref_t, atol=2e-2, rtol=2e-2)

    print("KERNEL_OK")
</pallas_src>

<mosaic_0001>
module attributes {stable_mosaic.version = 11 : i64} {
  func.func @fused_distiller_kernel(%arg0: i32, %arg1: memref<16x1024xbf16, #tpu.memory_space<vmem>>, %arg2: memref<1024x128xbf16, #tpu.memory_space<vmem>>, %arg3: memref<1x128xf32, #tpu.memory_space<vmem>>, %arg4: memref<128x256xbf16, #tpu.memory_space<vmem>>, %arg5: memref<1x256xf32, #tpu.memory_space<vmem>>, %arg6: memref<16x256xf32, #tpu.memory_space<vmem>>) attributes {dimension_semantics = [#tpu.dimension_semantics<parallel>], iteration_bounds = array<i64: 1>, scalar_prefetch = 0 : i64, scratch_operands = 0 : i64, tpu.core_type = #tpu.core_type<tc>, window_params = [{transform_indices = @transform_0, window_bounds = array<i64: 16, 1024>}, {pipeline_mode = #tpu.pipeline_mode<synchronous>, transform_indices = @transform_1, window_bounds = array<i64: 1024, 128>}, {pipeline_mode = #tpu.pipeline_mode<synchronous>, transform_indices = @transform_2, window_bounds = array<i64: 1, 128>}, {pipeline_mode = #tpu.pipeline_mode<synchronous>, transform_indices = @transform_3, window_bounds = array<i64: 128, 256>}, {pipeline_mode = #tpu.pipeline_mode<synchronous>, transform_indices = @transform_4, window_bounds = array<i64: 1, 256>}, {transform_indices = @transform_5, window_bounds = array<i64: 16, 256>}]} {
    %c0 = arith.constant 0 : index
    %c0_0 = arith.constant 0 : index
    %0 = vector.load %arg1[%c0, %c0_0] : memref<16x1024xbf16, #tpu.memory_space<vmem>>, vector<16x1024xbf16>
    %c0_1 = arith.constant 0 : index
    %c0_2 = arith.constant 0 : index
    %1 = vector.load %arg2[%c0_1, %c0_2] : memref<1024x128xbf16, #tpu.memory_space<vmem>>, vector<1024x128xbf16>
    %cst = arith.constant dense<0.000000e+00> : vector<16x128xf32>
    %2 = tpu.matmul %0, %1, %cst {dimension_numbers = #tpu.dot_dimension_numbers<[1], [0], [0], [1], [0, 0, 1, 1], [], []>} : vector<16x1024xbf16>, vector<1024x128xbf16>, vector<16x128xf32> -> vector<16x128xf32>
    %c0_3 = arith.constant 0 : index
    %c0_4 = arith.constant 0 : index
    %3 = vector.load %arg3[%c0_3, %c0_4] : memref<1x128xf32, #tpu.memory_space<vmem>>, vector<1x128xf32>
    %4 = vector.broadcast %3 : vector<1x128xf32> to vector<16x128xf32>
    %5 = arith.addf %2, %4 : vector<16x128xf32>
    %cst_5 = arith.constant 0.000000e+00 : f32
    %6 = vector.broadcast %cst_5 : f32 to vector<16x128xf32>
    %7 = arith.maximumf %5, %6 : vector<16x128xf32>
    %8 = arith.truncf %7 : vector<16x128xf32> to vector<16x128xbf16>
    %c0_6 = arith.constant 0 : index
    %c0_7 = arith.constant 0 : index
    %9 = vector.load %arg4[%c0_6, %c0_7] : memref<128x256xbf16, #tpu.memory_space<vmem>>, vector<128x256xbf16>
    %cst_8 = arith.constant dense<0.000000e+00> : vector<16x256xf32>
    %10 = tpu.matmul %8, %9, %cst_8 {dimension_numbers = #tpu.dot_dimension_numbers<[1], [0], [0], [1], [0, 0, 1, 1], [], []>} : vector<16x128xbf16>, vector<128x256xbf16>, vector<16x256xf32> -> vector<16x256xf32>
    %c0_9 = arith.constant 0 : index
    %c0_10 = arith.constant 0 : index
    %11 = vector.load %arg5[%c0_9, %c0_10] : memref<1x256xf32, #tpu.memory_space<vmem>>, vector<1x256xf32>
    %12 = vector.broadcast %11 : vector<1x256xf32> to vector<16x256xf32>
    %13 = arith.addf %10, %12 : vector<16x256xf32>
    %c0_11 = arith.constant 0 : index
    %c0_12 = arith.constant 0 : index
    %14 = vector.load %arg6[%c0_11, %c0_12] : memref<16x256xf32, #tpu.memory_space<vmem>>, vector<16x256xf32>
    tpu.vector_store %arg6[%c0_11, %c0_12], %13 {strides = array<i32>} : memref<16x256xf32, #tpu.memory_space<vmem>>, vector<16x256xf32>,
    return
  }
  func.func @transform_0(%arg0: i32) -> (i32, i32) {
    %c0_i32 = arith.constant 0 : i32
    %c0_i32_0 = arith.constant 0 : i32
    return %arg0, %c0_i32 : i32, i32
  }
  func.func @transform_1(%arg0: i32) -> (i32, i32) {
    %c0_i32 = arith.constant 0 : i32
    %c0_i32_0 = arith.constant 0 : i32
    %c0_i32_1 = arith.constant 0 : i32
    return %c0_i32, %c0_i32_0 : i32, i32
  }
  func.func @transform_2(%arg0: i32) -> (i32, i32) {
    %c0_i32 = arith.constant 0 : i32
    %c0_i32_0 = arith.constant 0 : i32
    %c0_i32_1 = arith.constant 0 : i32
    return %c0_i32, %c0_i32_0 : i32, i32
  }
  func.func @transform_3(%arg0: i32) -> (i32, i32) {
    %c0_i32 = arith.constant 0 : i32
    %c0_i32_0 = arith.constant 0 : i32
    %c0_i32_1 = arith.constant 0 : i32
    return %c0_i32, %c0_i32_0 : i32, i32
  }
  func.func @transform_4(%arg0: i32) -> (i32, i32) {
    %c0_i32 = arith.constant 0 : i32
    %c0_i32_0 = arith.constant 0 : i32
    %c0_i32_1 = arith.constant 0 : i32
    return %c0_i32, %c0_i32_0 : i32, i32
  }
  func.func @transform_5(%arg0: i32) -> (i32, i32) {
    %c0_i32 = arith.constant 0 : i32
    %c0_i32_0 = arith.constant 0 : i32
    return %arg0, %c0_i32 : i32, i32
  }
}

</mosaic_0001>

<bundles_post_ra>
// kernel: distiller_forward.1
= control target key start
LH: loop header
LB: loop body
LE: loop exit
PB: predicated region body
PF: predicated region fallthrough
CT: control target
= control target key end

     0   :  { %10 = vsyncpa [#allocation3], 0  ;;  %s1220_s18 = smov [#allocation2]   ;;  %s1347_s0 = inlined_call_operand.vmem [shape: bf16[16,1024], index: 0, kind: input, shape index: {}]   ;;  %s1348_s1 = inlined_call_operand.hbm [shape: bf16[1024,128], index: 1, kind: input, shape index: {}]   ;;  %s1349_s2 = inlined_call_operand.vmem [shape: f32[1,128], index: 2, kind: input, shape index: {}]   ;;  %s1350_s3 = inlined_call_operand.vmem [shape: bf16[128,256], index: 3, kind: input, shape index: {}]   ;;  %s1351_s4 = inlined_call_operand.vmem [shape: f32[1,256], index: 4, kind: input, shape index: {}]   ;;  %s1352_s5 = inlined_call_operand.vmem [shape: f32[16,256], index: 5, kind: output, shape index: {}]  }
   0x1   :  { %s18_s19 = sshll.u32 %s1220_s18, 4  ;;  %s19_s19 = int_to_ptr.vmem [resolvable:$true] %s18_s19 }
   0x2   :  { %s1206_s20 = scalar_lea.vmem %s19_s19, 8192  ;;  %p1211_p1 = scmp.lt.s32.totalorder %s19_s19, %s19_s19 }
   0x3   :  { %p1207_p0 = scmp.ne.s32.totalorder %s19_s19, %s1206_s20  ;;  %p1212_p2 = scmp.lt.s32.totalorder %s1206_s20, %s1206_s20 }
   0x5   :  { %p1213_p3 = por %p1212_p2, %p1211_p1 }
   0x7   :  { %p1214_p4 = pnand %p1213_p3, %p1207_p0 }
   0x9   :  { %1217 = shalt.err (!%p1214_p4)
}
   0xa   :  { %s1221_s21 = smov 64   ;;  %s1222_s22 = smov 4  }
   0xb   :  { %24 = dma.hbm_to_vmem [thread:$0]  %s1348_s1, 8192, %s19_s19, [#allocation3], %s1221_s21, %s1221_s21, %s1222_s22  }
   0xc   :  { %1218 = dma.done.wait [#allocation3], 8192  }
   0xd   :  { %1219 = vsyncadd [#allocation3], 4294959104  ;;  %v1110_v0 = vld [vmem:[#allocation2 + $0x78] sm:$0xff]   ;;  %v1114_v4 = vld [vmem:[#allocation2 + $0x70] sm:$0xff]  }
   0xe   :  { %v1111_v1 = vld [vmem:[#allocation2 + $0xf8] sm:$0xff]   ;;  %1018 = vmatprep.subr.bf16.mxu0 %v1110_v0  ;;  %v1115_v5 = vld [vmem:[#allocation2 + $0xf0] sm:$0xff]   ;;  %v1118_v8 = vld [vmem:[#allocation2 + $0x68] sm:$0xff]  }
   0xf   :  { %v1112_v2 = vld [vmem:[#allocation2 + $0x38] sm:$0xff]   ;;  %1040 = vmatprep.subr.bf16.mxu1 %v1111_v1  ;;  %v1116_v6 = vld [vmem:[#allocation2 + $0x30] sm:$0xff]   ;;  %v1119_v9 = vld [vmem:[#allocation2 + $0xe8] sm:$0xff]  }
  0x10   :  { %v1113_v3 = vld [vmem:[#allocation2 + $0xb8] sm:$0xff]   ;;  %1019 = vmatpush3.bf16.msra.mxu0 %v1112_v2  ;;  %v1117_v7 = vld [vmem:[#allocation2 + $0xb0] sm:$0xff]   ;;  %v1120_v10 = vld [vmem:[#allocation2 + $0x28] sm:$0xff]  }
  0x11   :  { %1041 = vmatpush3.bf16.msra.mxu1 %v1113_v3  ;;  %1020 = vmatprep.subr.bf16.mxu0 %v1114_v4  ;;  %v1121_v11 = vld [vmem:[#allocation2 + $0xa8] sm:$0xff]   ;;  %v1122_v12 = vld [vmem:[#allocation2 + $0x60] sm:$0xff]   ;;  %v1126_v16 = vld [vmem:[#allocation2 + $0x58] sm:$0xff]  }
  0x12   :  { %1042 = vmatprep.subr.bf16.mxu1 %v1115_v5  ;;  %v1123_v13 = vld [vmem:[#allocation2 + $0xe0] sm:$0xff]   ;;  %v1127_v17 = vld [vmem:[#allocation2 + $0xd8] sm:$0xff]   ;;  %v1130_v20 = vld [vmem:[#allocation2 + $0x50] sm:$0xff]  }
  0x13   :  { %v1124_v14 = vld [vmem:[#allocation2 + $0x20] sm:$0xff]   ;;  %v1128_v18 = vld [vmem:[#allocation2 + $0x18] sm:$0xff]   ;;  %v1131_v21 = vld [vmem:[#allocation2 + $0xd0] sm:$0xff]  }
  0x14   :  { %1021 = vmatpush3.bf16.msra.mxu0 %v1116_v6  ;;  %v1125_v15 = vld [vmem:[#allocation2 + $0xa0] sm:$0xff]   ;;  %v1129_v19 = vld [vmem:[#allocation2 + $0x98] sm:$0xff]   ;;  %v1132_v22 = vld [vmem:[#allocation2 + $0x10] sm:$0xff]  }
  0x15   :  { %1043 = vmatpush3.bf16.msra.mxu1 %v1117_v7  ;;  %1022 = vmatprep.subr.bf16.mxu0 %v1118_v8  ;;  %v1133_v23 = vld [vmem:[#allocation2 + $0x90] sm:$0xff]   ;;  %v1134_v24 = vld [vmem:[#allocation2 + $0x48] sm:$0xff]   ;;  %v1138_v28 = vld [vmem:[#allocation2 + $0x40] sm:$0xff]  }
  0x16   :  { %1044 = vmatprep.subr.bf16.mxu1 %v1119_v9  ;;  %v1135_v25 = vld [vmem:[#allocation2 + $0xc8] sm:$0xff]   ;;  %v1139_v29 = vld [vmem:[#allocation2 + $0xc0] sm:$0xff]   ;;  %v1142_v40 = vld [vmem:[#allocation2 + $0x178] sm:$0xff]  }
  0x17   :  { %v1136_v26 = vld [vmem:[#allocation2 + $0x8] sm:$0xff]   ;;  %v1140_v30 = vld [vmem:[#allocation2] sm:$0xff]   ;;  %v1143_v41 = vld [vmem:[#allocation2 + $0x1f8] sm:$0xff]  }
  0x18   :  { %1023 = vmatpush3.bf16.msra.mxu0 %v1120_v10  ;;  %v1137_v27 = vld [vmem:[#allocation2 + $0x88] sm:$0xff]   ;;  %v1141_v31 = vld [vmem:[#allocation2 + $0x80] sm:$0xff]   ;;  %v1144_v42 = vld [vmem:[#allocation2 + $0x138] sm:$0xff]  }
  0x19   :  { %1045 = vmatpush3.bf16.msra.mxu1 %v1121_v11  ;;  %1024 = vmatprep.subr.bf16.mxu0 %v1122_v12  ;;  %v35_v32 = vld [vmem:[%s1347_s0] sm:$0xff]  ;;  %v36_v34 = vld [vmem:[%s1347_s0 + $0x8] sm:$0xff]  ;;  %v1145_v43 = vld [vmem:[#allocation2 + $0x1b8] sm:$0xff]  }
  0x1a   :  { %1046 = vmatprep.subr.bf16.mxu1 %v1123_v13  ;;  %v39_v33 = vld [vmem:[%s1347_s0 + $0x20] sm:$0xff]  ;;  %v40_v37 = vld [vmem:[%s1347_s0 + $0x28] sm:$0xff]  ;;  %v1146_v44 = vld [vmem:[#allocation2 + $0x170] sm:$0xff]  }
  0x1b   :  { %v930_v35 = vcombine.low %v35_v32, %v39_v33  ;;  %v931_v36 = vcombine.high %v35_v32, %v39_v33  ;;  %v932_v38 = vcombine.low %v36_v34, %v40_v37  ;;  %v933_v39 = vcombine.high %v36_v34, %v40_v37  ;;  %v1147_v45 = vld [vmem:[#allocation2 + $0x1f0] sm:$0xff]   ;;  %v1150_v48 = vld [vmem:[#allocation2 + $0x168] sm:$0xff]   ;;  %v1154_v52 = vld [vmem:[#allocation2 + $0x160] sm:$0xff]  }
  0x1c   :  { %1025 = vmatpush3.bf16.msra.mxu0 %v1124_v14  ;;  %v1148_v46 = vld [vmem:[#allocation2 + $0x130] sm:$0xff]   ;;  %v1151_v49 = vld [vmem:[#allocation2 + $0x1e8] sm:$0xff]   ;;  %v1155_v53 = vld [vmem:[#allocation2 + $0x1e0] sm:$0xff]   ;;  %v1223_v32 = vmov 0  }
  0x1d   :  { %1047 = vmatpush3.bf16.msra.mxu1 %v1125_v15  ;;  %1026 = vmatprep.subr.bf16.mxu0 %v1126_v16  ;;  %v1149_v47 = vld [vmem:[#allocation2 + $0x1b0] sm:$0xff]   ;;  %v1152_v50 = vld [vmem:[#allocation2 + $0x128] sm:$0xff]   ;;  %v1156_v54 = vld [vmem:[#allocation2 + $0x120] sm:$0xff]  }
  0x1e   :  { %1048 = vmatprep.subr.bf16.mxu1 %v1127_v17  ;;  %634 = vmatprep.mubr.bf16.mxu0 %v931_v36  ;;  %v1153_v51 = vld [vmem:[#allocation2 + $0x1a8] sm:$0xff]   ;;  %v1157_v55 = vld [vmem:[#allocation2 + $0x1a0] sm:$0xff]   ;;  %v1158_v56 = vld [vmem:[#allocation2 + $0x158] sm:$0xff]  }
  0x1f   :  { %675 = vmatprep.mubr.bf16.mxu1 %v933_v39  ;;  %v1159_v57 = vld [vmem:[#allocation2 + $0x1d8] sm:$0xff]   ;;  %v1162_v60 = vld [vmem:[#allocation2 + $0x150] sm:$0xff]   ;;  %v1166_v0 = vld [vmem:[#allocation2 + $0x148] sm:$0xff]  }
  0x20   :  { %1027 = vmatpush3.bf16.msra.mxu0 %v1128_v18  ;;  %v1160_v58 = vld [vmem:[#allocation2 + $0x118] sm:$0xff]   ;;  %v1163_v61 = vld [vmem:[#allocation2 + $0x1d0] sm:$0xff]   ;;  %v1167_v1 = vld [vmem:[#allocation2 + $0x1c8] sm:$0xff]  }
  0x21   :  { %1049 = vmatpush3.bf16.msra.mxu1 %v1129_v19  ;;  %1028 = vmatprep.subr.bf16.mxu0 %v1130_v20  ;;  %v1161_v59 = vld [vmem:[#allocation2 + $0x198] sm:$0xff]   ;;  %v1164_v62 = vld [vmem:[#allocation2 + $0x110] sm:$0xff]   ;;  %v1168_v2 = vld [vmem:[#allocation2 + $0x108] sm:$0xff]  }
  0x22   :  { %1050 = vmatprep.subr.bf16.mxu1 %v1131_v21  ;;  %v1165_v63 = vld [vmem:[#allocation2 + $0x190] sm:$0xff]   ;;  %v1169_v3 = vld [vmem:[#allocation2 + $0x188] sm:$0xff]   ;;  %v1170_v4 = vld [vmem:[#allocation2 + $0x140] sm:$0xff]  }
  0x23   :  { %v1171_v5 = vld [vmem:[#allocation2 + $0x1c0] sm:$0xff]   ;;  %v37_v8 = vld [vmem:[%s1347_s0 + $0x10] sm:$0xff]  ;;  %v38_v12 = vld [vmem:[%s1347_s0 + $0x18] sm:$0xff] }
  0x24   :  { %1029 = vmatpush3.bf16.msra.mxu0 %v1132_v22  ;;  %v1172_v6 = vld [vmem:[#allocation2 + $0x100] sm:$0xff]   ;;  %v41_v9 = vld [vmem:[%s1347_s0 + $0x30] sm:$0xff]  ;;  %v42_v13 = vld [vmem:[%s1347_s0 + $0x38] sm:$0xff] }
  0x25   :  { %1051 = vmatpush3.bf16.msra.mxu1 %v1133_v23  ;;  %1030 = vmatprep.subr.bf16.mxu0 %v1134_v24  ;;  %v1173_v7 = vld [vmem:[#allocation2 + $0x180] sm:$0xff]   ;;  %v934_v10 = vcombine.low %v37_v8, %v41_v9  ;;  %v935_v11 = vcombine.high %v37_v8, %v41_v9  ;;  %v936_v14 = vcombine.low %v38_v12, %v42_v13  ;;  %v1174_v16 = vld [vmem:[%s1350_s3 + $0x70] ss:$8 sps:$4 sm:$0xff]   ;;  %v1176_v17 = vld [vmem:[%s1350_s3 + $0x74] ss:$8 sps:$4 sm:$0xff]  }
  0x26   :  { %1052 = vmatprep.subr.bf16.mxu1 %v1135_v25  ;;  %v937_v15 = vcombine.high %v38_v12, %v42_v13  ;;  %v1179_v18 = vld [vmem:[%s1350_s3 + $0x64] ss:$8 sps:$4 sm:$0xff]   ;;  %v1177_v19 = vld [vmem:[%s1350_s3 + $0x60] ss:$8 sps:$4 sm:$0xff]   ;;  %v1182_v20 = vld [vmem:[%s1350_s3 + $0x54] ss:$8 sps:$4 sm:$0xff]  }
  0x27   :  { %v1180_v21 = vld [vmem:[%s1350_s3 + $0x50] ss:$8 sps:$4 sm:$0xff]   ;;  %v1185_v22 = vld [vmem:[%s1350_s3 + $0x44] ss:$8 sps:$4 sm:$0xff]   ;;  %v1183_v23 = vld [vmem:[%s1350_s3 + $0x40] ss:$8 sps:$4 sm:$0xff]  }
  0x28   :  { %1031 = vmatpush3.bf16.msra.mxu0 %v1136_v26  ;;  %v1188_v24 = vld [vmem:[%s1350_s3 + $0x34] ss:$8 sps:$4 sm:$0xff]   ;;  %v1186_v25 = vld [vmem:[%s1350_s3 + $0x30] ss:$8 sps:$4 sm:$0xff]   ;;  %v1191_v26 = vld [vmem:[%s1350_s3 + $0x24] ss:$8 sps:$4 sm:$0xff]  }
  0x29   :  { %1053 = vmatpush3.bf16.msra.mxu1 %v1137_v27  ;;  %1032 = vmatprep.subr.bf16.mxu0 %v1138_v28  ;;  %v1189_v27 = vld [vmem:[%s1350_s3 + $0x20] ss:$8 sps:$4 sm:$0xff]   ;;  %v1194_v28 = vld [vmem:[%s1350_s3 + $0x14] ss:$8 sps:$4 sm:$0xff]  }
  0x2a   :  { %1054 = vmatprep.subr.bf16.mxu1 %v1139_v29  ;;  %v1192_v29 = vld [vmem:[%s1350_s3 + $0x10] ss:$8 sps:$4 sm:$0xff]   ;;  %v785_v8 = vld [vmem:[%s1351_s4] sm:$0x3] }
  0x2c   :  { %1033 = vmatpush3.bf16.msra.mxu0 %v1140_v30  ;;  %v1197_v30 = vld [vmem:[%s1350_s3 + $0x4] ss:$8 sps:$4 sm:$0xff]  }
  0x2d   :  { %1055 = vmatpush3.bf16.msra.mxu1 %v1141_v31  ;;  %1062 = vmatprep.subr.bf16.mxu0 %v1142_v40  ;;  %v1195_v31 = vld [vmem:[%s1350_s3] ss:$8 sps:$4 sm:$0xff]  }
  0x2e   :  { %1084 = vmatprep.subr.bf16.mxu1 %v1143_v41  ;;  %v929_v40 = vld [vmem:[%s1349_s2] ss:$0 sm:$0xff] }
  0x2f   :  { %635 = vmatmul.mubr.bf16.vlgmr.msra.gmra.mxu0 %v930_v35 }
  0x30   :  { %676 = vmatmul.mubr.bf16.vlgmr.msra.gmra.mxu1 %v932_v38  ;;  %1063 = vmatpush3.bf16.msra.mxu0 %v1144_v42 }
  0x31   :  { %1085 = vmatpush3.bf16.msra.mxu1 %v1145_v43  ;;  %1064 = vmatprep.subr.bf16.mxu0 %v1146_v44 }
  0x32   :  { %1086 = vmatprep.subr.bf16.mxu1 %v1147_v45  ;;  %716 = vmatprep.mubr.bf16.mxu0 %v935_v11 }
  0x33   :  { %757 = vmatprep.mubr.bf16.mxu1 %v937_v15 }
  0x34   :  { %1065 = vmatpush3.bf16.msra.mxu0 %v1148_v46 }
  0x35   :  { %1087 = vmatpush3.bf16.msra.mxu1 %v1149_v47  ;;  %1066 = vmatprep.subr.bf16.mxu0 %v1150_v48 }
  0x36   :  { %1088 = vmatprep.subr.bf16.mxu1 %v1151_v49 }
  0x38   :  { %1067 = vmatpush3.bf16.msra.mxu0 %v1152_v50 }
  0x39   :  { %1089 = vmatpush3.bf16.msra.mxu1 %v1153_v51  ;;  %1068 = vmatprep.subr.bf16.mxu0 %v1154_v52 }
  0x3a   :  { %1090 = vmatprep.subr.bf16.mxu1 %v1155_v53 }
  0x3c   :  { %1069 = vmatpush3.bf16.msra.mxu0 %v1156_v54 }
  0x3d   :  { %1091 = vmatpush3.bf16.msra.mxu1 %v1157_v55  ;;  %1070 = vmatprep.subr.bf16.mxu0 %v1158_v56 }
  0x3e   :  { %1092 = vmatprep.subr.bf16.mxu1 %v1159_v57 }
  0x40   :  { %1071 = vmatpush3.bf16.msra.mxu0 %v1160_v58 }
  0x41   :  { %1093 = vmatpush3.bf16.msra.mxu1 %v1161_v59  ;;  %1072 = vmatprep.subr.bf16.mxu0 %v1162_v60 }
  0x42   :  { %1094 = vmatprep.subr.bf16.mxu1 %v1163_v61 }
  0x44   :  { %1073 = vmatpush3.bf16.msra.mxu0 %v1164_v62 }
  0x45   :  { %1095 = vmatpush3.bf16.msra.mxu1 %v1165_v63  ;;  %1074 = vmatprep.subr.bf16.mxu0 %v1166_v0 }
  0x46   :  { %1096 = vmatprep.subr.bf16.mxu1 %v1167_v1 }
  0x48   :  { %1075 = vmatpush3.bf16.msra.mxu0 %v1168_v2 }
  0x49   :  { %1097 = vmatpush3.bf16.msra.mxu1 %v1169_v3  ;;  %1076 = vmatprep.subr.bf16.mxu0 %v1170_v4 }
  0x4a   :  { %1098 = vmatprep.subr.bf16.mxu1 %v1171_v5  ;;  %v787_v5 = vlaneseq }
  0x4c   :  { %1077 = vmatpush3.bf16.msra.mxu0 %v1172_v6  ;;  %v788_v6 = vshrl.u32 %v787_v5, 7 }
  0x4d   :  { %1099 = vmatpush3.bf16.msra.mxu1 %v1173_v7  ;;  %877 = vmatprep.subr.bf16.mxu0 %v1176_v17 }
  0x4e   :  { %v789_v7 = vsub.s32 0, %v788_v6  ;;  %v793_v9 = vsub.s32 1, %v788_v6 }
  0x4f   :  { %717 = vmatmul.mubr.bf16.vlgmr.msra.gmra.mxu0 %v934_v10 }
  0x50   :  { %758 = vmatmul.mubr.bf16.vlgmr.msra.gmra.mxu1 %v936_v14  ;;  %878 = vmatpush1.bf16.msra.mxu0 %v1174_v16  ;;  %v790_v10 = vrot.slane %v785_v8, %v789_v7  ;;  %v794_v11 = vrot.slane %v785_v8, %v793_v9 }
  0x51   :  { %879 = vmatprep.subr.bf16.mxu0 %v1179_v18  ;;  %909 = vmatprep.mubr.bf16.mxu0 %v1223_v32 }
  0x54   :  { %880 = vmatpush1.bf16.msra.mxu0 %v1177_v19 }
  0x55   :  { %881 = vmatprep.subr.bf16.mxu0 %v1182_v20 }
  0x58   :  { %882 = vmatpush1.bf16.msra.mxu0 %v1180_v21 }
  0x59   :  { %883 = vmatprep.subr.bf16.mxu0 %v1185_v22 }
  0x5c   :  { %884 = vmatpush1.bf16.msra.mxu0 %v1183_v23 }
  0x5d   :  { %885 = vmatprep.subr.bf16.mxu0 %v1188_v24 }
  0x60   :  { %886 = vmatpush1.bf16.msra.mxu0 %v1186_v25 }
  0x61   :  { %887 = vmatprep.subr.bf16.mxu0 %v1191_v26 }
  0x64   :  { %888 = vmatpush1.bf16.msra.mxu0 %v1189_v27 }
  0x65   :  { %889 = vmatprep.subr.bf16.mxu0 %v1194_v28 }
  0x68   :  { %890 = vmatpush1.bf16.msra.mxu0 %v1192_v29 }
  0x69   :  { %891 = vmatprep.subr.bf16.mxu0 %v1197_v30 }
  0x6c   :  { %892 = vmatpush1.bf16.msra.mxu0 %v1195_v31 }
  0xef   :  { %v1034_v33 = vpop.f32.mrf.mxu0 }
  0xf0   :  { %v1056_v34 = vpop.f32.mrf.mxu1 }
  0xf1   :  { %v1035_v35 = vpop.f32.mrf.mxu0 }
  0xf2   :  { %v1057_v36 = vpop.f32.mrf.mxu1  ;;  %v1036_v38 = vadd.f32 %v1035_v35, %v1034_v33 }
  0xf3   :  { %v1037_v37 = vpop.f32.mrf.mxu0  ;;  %v1058_v43 = vadd.f32 %v1057_v36, %v1056_v34 }
  0xf4   :  { %v1059_v39 = vpop.f32.mrf.mxu1  ;;  %v637_v42 = vadd.f32 %v1036_v38, %v929_v40 }
  0xf5   :  { %v1038_v41 = vpop.f32.mrf.mxu0 }
  0xf6   :  { %v1039_v44 = vadd.f32 %v1038_v41, %v1037_v37  ;;  %v1060_v45 = vpop.f32.mrf.mxu1  ;;  %v678_v49 = vadd.f32 %v1058_v43, %v637_v42 }
  0xf7   :  { %v1061_v54 = vadd.f32 %v1060_v45, %v1059_v39 }
  0xf8   :  { %v640_v50 = vadd.f32 %v1039_v44, %v929_v40 }
  0xfa   :  { %v681_v58 = vadd.f32 %v1061_v54, %v640_v50 }
 0x10f   :  { %v1078_v46 = vpop.f32.mrf.mxu0 }
 0x110   :  { %v1100_v47 = vpop.f32.mrf.mxu1 }
 0x111   :  { %v1079_v48 = vpop.f32.mrf.mxu0 }
 0x112   :  { %v1080_v51 = vadd.f32 %v1079_v48, %v1078_v46  ;;  %v1101_v52 = vpop.f32.mrf.mxu1 }
 0x113   :  { %v1081_v53 = vpop.f32.mrf.mxu0  ;;  %v1102_v59 = vadd.f32 %v1101_v52, %v1100_v47 }
 0x114   :  { %v719_v55 = vadd.f32 %v1080_v51, %v678_v49  ;;  %v1103_v56 = vpop.f32.mrf.mxu1 }
 0x115   :  { %v1082_v57 = vpop.f32.mrf.mxu0 }
 0x116   :  { %v1083_v60 = vadd.f32 %v1082_v57, %v1081_v53  ;;  %v1104_v61 = vpop.f32.mrf.mxu1  ;;  %v760_v62 = vadd.f32 %v1102_v59, %v719_v55 }
 0x117   :  { %v1105_v0 = vadd.f32 %v1104_v61, %v1103_v56 }
 0x118   :  { %v722_v63 = vadd.f32 %v1083_v60, %v681_v58  ;;  %v766_v2 = vmax.f32 %v760_v62, 0.0 }
 0x11a   :  { %v763_v1 = vadd.f32 %v1105_v0, %v722_v63 }
 0x11c   :  { %v767_v3 = vmax.f32 %v763_v1, 0.0 }
 0x11e   :  { %v768_v4 = vpack.c.bf16 %v767_v3, %v766_v2 }
 0x120   :  { %910 = vmatmul.mubr.bf16.vlgmr.msra.gmra.mxu0 %v768_v4 }
 0x1e0   :  { %v911_v12 = vpop.f32.mrf.mxu0 }
 0x1e1   :  { %v912_v13 = vadd.f32 %v911_v12, %v790_v10 }
 0x1e2   :  { %v913_v14 = vpop.f32.mrf.mxu0 }
 0x1e3   :  { %920 = vst [vmem:[%s1352_s5] sm:$0xff] %v912_v13  ;;  %v914_v15 = vadd.f32 %v913_v14, %v794_v11 }
 0x1e4   :  { %v915_v16 = vpop.f32.mrf.mxu0 }
 0x1e5   :  { %921 = vst [vmem:[%s1352_s5 + $0x8] sm:$0xff] %v914_v15  ;;  %v916_v17 = vadd.f32 %v915_v16, %v790_v10 }
 0x1e6   :  { %v917_v18 = vpop.f32.mrf.mxu0 }
 0x1e7   :  { %922 = vst [vmem:[%s1352_s5 + $0x10] sm:$0xff] %v916_v17  ;;  %v918_v19 = vadd.f32 %v917_v18, %v794_v11 }
 0x1e9   :  { %923 = vst [vmem:[%s1352_s5 + $0x18] sm:$0xff] %v918_v19 }
 0x1ea   :  { %928 = vsyncpa [#allocation3], 1 }

</bundles_post_ra>
